<compile_context>
chip_gen: v7x
topology: tpu7x:2x2x1
jax: 0.10.0
libtpu: 0.0.40
codegen_flags: <defaults>
</compile_context>

<pallas_src>
import math
import functools

import jax
import jax.numpy as jnp
from jax.experimental import pallas as pl
from jax.experimental.pallas import tpu as pltpu


# ---------------------------------------------------------------------------
# Fused kernel: W_pack -> RoPE -> softmax attention -> o_proj, one batch elem
# ---------------------------------------------------------------------------
def _fused_attention_kernel(x_ref, wp_ref, wo_ref, cos_ref, sin_ref, o_ref, *,
                            num_heads, head_dim, sm_scale):
    """x_ref:(S,H)  wp_ref:(H,3H)  wo_ref:(H,H)  cos/sin_ref:(S,D)  o_ref:(S,H)."""
    D = head_dim
    H = num_heads * head_dim

    x = x_ref[...]
    # QKV projection on the MXU, f32 accumulation. Result stays in VMEM/vregs.
    proj = jnp.dot(x, wp_ref[...], preferred_element_type=jnp.float32)  # (S, 3H)

    cos = cos_ref[...]        # (S, D)
    sin_s = sin_ref[...]      # (S, D), rotate_half sign pre-folded: [-sin_lo, +sin_hi]

    def rope(t):              # t: (S, D) f32
        rot = jnp.concatenate([t[:, D // 2:], t[:, :D // 2]], axis=1)
        return t * cos + rot * sin_s

    # Per-head attention; all heads of this batch element are processed inside
    # the same kernel invocation and written back as one lane-dense (S, H) slab.
    # TODO(synk): for long sequences convert to a flash-style KV-tiled online
    # softmax (extra "arbitrary" grid axis, m/l/acc scratch) instead of the
    # full (S, S) score matrix.
    out_heads = []
    for h in range(num_heads):
        q = proj[:, h * D:(h + 1) * D]
        k = proj[:, H + h * D:H + (h + 1) * D]
        v = proj[:, 2 * H + h * D:2 * H + (h + 1) * D]

        # Scale q once (S*D muls) instead of the (S, S) score matrix.
        q = rope(q) * sm_scale
        k = rope(k)

        s = jnp.dot(q, k.T, preferred_element_type=jnp.float32)       # (S, S)
        s = s - jnp.max(s, axis=-1, keepdims=True)
        p = jnp.exp(s)
        # divide -> EUP reciprocal (otherwise-idle slot)
        p = p * pl.reciprocal(jnp.sum(p, axis=-1, keepdims=True), approx=True)
        out_heads.append(jnp.dot(p.astype(v.dtype), v,
                                 preferred_element_type=jnp.float32))

    attn = jnp.concatenate(out_heads, axis=1)                          # (S, H)

    o = jnp.dot(attn.astype(wo_ref.dtype), wo_ref[...],
                preferred_element_type=jnp.float32)
    o_ref[...] = o.astype(o_ref.dtype)


def fused_attention(hidden_states, w_pack, w_o, num_heads):
    """hidden_states:(B,S,H); w_pack:(H,3H); w_o:(H,H) -> (B,S,H)."""
    B, S, H = hidden_states.shape
    D = H // num_heads
    cos, sin_s = rotary_tables(S, D)

    kernel = functools.partial(_fused_attention_kernel,
                               num_heads=num_heads, head_dim=D,
                               sm_scale=1.0 / math.sqrt(D))

    # TODO(synk): at large hidden sizes W_pack/W_o no longer fit in VMEM as a
    # single block; tile the projections (K/N grid axes + f32 accumulator or
    # pltpu.emit_pipeline) instead of full-weight blocks.
    return pl.pallas_call(
        kernel,
        out_shape=jax.ShapeDtypeStruct((B, S, H), hidden_states.dtype),
        grid=(B,),
        in_specs=[
            pl.BlockSpec((None, S, H), lambda b: (b, 0, 0)),   # x (per batch)
            pl.BlockSpec((H, 3 * H), lambda b: (0, 0)),        # W_pack (resident)
            pl.BlockSpec((H, H), lambda b: (0, 0)),            # W_o    (resident)
            pl.BlockSpec((S, D), lambda b: (0, 0)),            # cos
            pl.BlockSpec((S, D), lambda b: (0, 0)),            # sin (sign-folded)
        ],
        out_specs=pl.BlockSpec((None, S, H), lambda b: (b, 0, 0)),
        compiler_params=pltpu.CompilerParams(
            dimension_semantics=("parallel",)),                # shard batch over TCs
    )(hidden_states, w_pack, w_o, cos, sin_s)


# ---------------------------------------------------------------------------
# Rotary tables (sign of rotate_half folded into the sin table) & params
# ---------------------------------------------------------------------------
def rotary_tables(seq_len, dim, base=10000.0):
    inv_freq = 1.0 / (base ** (jnp.arange(0, dim, 2, dtype=jnp.float32) / dim))
    t = jnp.arange(seq_len, dtype=jnp.float32)
    freqs = jnp.einsum("i,j->ij", t, inv_freq)          # (S, D/2)
    emb = jnp.concatenate([freqs, freqs], axis=-1)      # (S, D)
    cos = jnp.cos(emb)
    sin = jnp.sin(emb)
    # rotate_half(x) = concat(-x[D/2:], x[:D/2]); kernel instead computes
    # concat(x[D/2:], x[:D/2]) * sin_signed with the sign folded in here.
    sign = jnp.concatenate([-jnp.ones((dim // 2,), jnp.float32),
                            jnp.ones((dim // 2,), jnp.float32)])
    return cos, sin * sign


def init_params(key, hidden_size):
    k1, k2 = jax.random.split(key)
    # stored already-transposed: y = x @ w  (torch does y = x @ W.T)
    w_pack = 0.02 * jax.random.normal(k1, (hidden_size, 3 * hidden_size), jnp.float32)
    w_o = 0.02 * jax.random.normal(k2, (hidden_size, hidden_size), jnp.float32)
    return w_pack, w_o


def attention_forward(hidden_states, w_pack, w_o, num_heads):
    return fused_attention(hidden_states, w_pack, w_o, num_heads)


# ---------------------------------------------------------------------------
# Pure-JAX reference (mirrors the PyTorch forward) for validation
# ---------------------------------------------------------------------------
def reference_forward(hidden_states, w_pack, w_o, num_heads):
    B, S, H = hidden_states.shape
    D = H // num_heads
    proj = hidden_states.reshape(B * S, H) @ w_pack
    proj = proj.reshape(B, S, 3, num_heads, D)
    q = proj[:, :, 0].transpose(0, 2, 1, 3)
    k = proj[:, :, 1].transpose(0, 2, 1, 3)
    v = proj[:, :, 2].transpose(0, 2, 1, 3)

    inv_freq = 1.0 / (10000.0 ** (jnp.arange(0, D, 2, dtype=jnp.float32) / D))
    t = jnp.arange(S, dtype=jnp.float32)
    freqs = jnp.einsum("i,j->ij", t, inv_freq)
    emb = jnp.concatenate([freqs, freqs], axis=-1)
    cos, sin = jnp.cos(emb), jnp.sin(emb)

    def rot_half(x):
        return jnp.concatenate([-x[..., D // 2:], x[..., :D // 2]], axis=-1)

    q = q * cos + rot_half(q) * sin
    k = k * cos + rot_half(k) * sin
    scores = jnp.einsum("bhqd,bhkd->bhqk", q, k) / math.sqrt(D)
    p = jax.nn.softmax(scores.astype(jnp.float32), axis=-1)
    attn = jnp.einsum("bhqk,bhkd->bhqd", p, v)
    attn = attn.transpose(0, 2, 1, 3).reshape(B * S, H)
    return (attn @ w_o).reshape(B, S, H)


if __name__ == "__main__":
    # config: hidden_size=32, num_attention_heads=4, max_position_embeddings>=8
    B, S, H, NH = 2, 8, 32, 4

    key = jax.random.PRNGKey(0)
    k_x, k_p = jax.random.split(key)
    x = jax.random.normal(k_x, (B, S, H), jnp.float32)
    w_pack, w_o = init_params(k_p, H)

    out = attention_forward(x, w_pack, w_o, NH)
    out = jax.block_until_ready(out)

    ref = reference_forward(x, w_pack, w_o, NH)
    assert out.shape == (B, S, H)
    # tolerance accounts for the EUP approx reciprocal in the softmax denom
    assert jnp.allclose(out, ref, atol=1e-3, rtol=1e-3), "mismatch vs reference"

    print("KERNEL_OK")
</pallas_src>

<mosaic_0001>
module attributes {stable_mosaic.version = 11 : i64} {
  func.func @_fused_attention_kernel(%arg0: i32, %arg1: memref<1x8x32xf32, #tpu.memory_space<vmem>>, %arg2: memref<32x96xf32, #tpu.memory_space<vmem>>, %arg3: memref<32x32xf32, #tpu.memory_space<vmem>>, %arg4: memref<8x8xf32, #tpu.memory_space<vmem>>, %arg5: memref<8x8xf32, #tpu.memory_space<vmem>>, %arg6: memref<1x8x32xf32, #tpu.memory_space<vmem>>) attributes {dimension_semantics = [#tpu.dimension_semantics<parallel>], iteration_bounds = array<i64: 2>, scalar_prefetch = 0 : i64, scratch_operands = 0 : i64, tpu.core_type = #tpu.core_type<tc>, window_params = [{transform_indices = @transform_0, window_bounds = array<i64: 1, 8, 32>}, {pipeline_mode = #tpu.pipeline_mode<synchronous>, transform_indices = @transform_1, window_bounds = array<i64: 32, 96>}, {pipeline_mode = #tpu.pipeline_mode<synchronous>, transform_indices = @transform_2, window_bounds = array<i64: 32, 32>}, {pipeline_mode = #tpu.pipeline_mode<synchronous>, transform_indices = @transform_3, window_bounds = array<i64: 8, 8>}, {pipeline_mode = #tpu.pipeline_mode<synchronous>, transform_indices = @transform_4, window_bounds = array<i64: 8, 8>}, {transform_indices = @transform_5, window_bounds = array<i64: 1, 8, 32>}]} {
    %c0 = arith.constant 0 : index
    %c0_0 = arith.constant 0 : index
    %c0_1 = arith.constant 0 : index
    %0 = vector.load %arg1[%c0, %c0_0, %c0_1] : memref<1x8x32xf32, #tpu.memory_space<vmem>>, vector<1x8x32xf32>
    %1 = vector.shape_cast %0 : vector<1x8x32xf32> to vector<8x32xf32>
    %c0_2 = arith.constant 0 : index
    %c0_3 = arith.constant 0 : index
    %2 = vector.load %arg2[%c0_2, %c0_3] : memref<32x96xf32, #tpu.memory_space<vmem>>, vector<32x96xf32>
    %cst = arith.constant dense<0.000000e+00> : vector<8x96xf32>
    %3 = tpu.matmul %1, %2, %cst {dimension_numbers = #tpu.dot_dimension_numbers<[1], [0], [0], [1], [0, 0, 1, 1], [], []>} : vector<8x32xf32>, vector<32x96xf32>, vector<8x96xf32> -> vector<8x96xf32>
    %c0_4 = arith.constant 0 : index
    %c0_5 = arith.constant 0 : index
    %4 = vector.load %arg4[%c0_4, %c0_5] : memref<8x8xf32, #tpu.memory_space<vmem>>, vector<8x8xf32>
    %c0_6 = arith.constant 0 : index
    %c0_7 = arith.constant 0 : index
    %5 = vector.load %arg5[%c0_6, %c0_7] : memref<8x8xf32, #tpu.memory_space<vmem>>, vector<8x8xf32>
    %6 = vector.extract_strided_slice %3 {offsets = [0, 0], sizes = [8, 8], strides = [1, 1]} : vector<8x96xf32> to vector<8x8xf32>
    %7 = vector.extract_strided_slice %3 {offsets = [0, 32], sizes = [8, 8], strides = [1, 1]} : vector<8x96xf32> to vector<8x8xf32>
    %8 = vector.extract_strided_slice %3 {offsets = [0, 64], sizes = [8, 8], strides = [1, 1]} : vector<8x96xf32> to vector<8x8xf32>
    %9 = vector.extract_strided_slice %6 {offsets = [0, 4], sizes = [8, 4], strides = [1, 1]} : vector<8x8xf32> to vector<8x4xf32>
    %10 = vector.extract_strided_slice %6 {offsets = [0, 0], sizes = [8, 4], strides = [1, 1]} : vector<8x8xf32> to vector<8x4xf32>
    %11 = tpu.concatenate %9, %10 in 1 : vector<8x4xf32>, vector<8x4xf32> -> vector<8x8xf32>
    %12 = arith.mulf %6, %4 : vector<8x8xf32>
    %13 = arith.mulf %11, %5 : vector<8x8xf32>
    %14 = arith.addf %12, %13 : vector<8x8xf32>
    %cst_8 = arith.constant 0.353553385 : f32
    %15 = vector.broadcast %cst_8 : f32 to vector<8x8xf32>
    %16 = arith.mulf %14, %15 : vector<8x8xf32>
    %17 = vector.extract_strided_slice %7 {offsets = [0, 4], sizes = [8, 4], strides = [1, 1]} : vector<8x8xf32> to vector<8x4xf32>
    %18 = vector.extract_strided_slice %7 {offsets = [0, 0], sizes = [8, 4], strides = [1, 1]} : vector<8x8xf32> to vector<8x4xf32>
    %19 = tpu.concatenate %17, %18 in 1 : vector<8x4xf32>, vector<8x4xf32> -> vector<8x8xf32>
    %20 = arith.mulf %7, %4 : vector<8x8xf32>
    %21 = arith.mulf %19, %5 : vector<8x8xf32>
    %22 = arith.addf %20, %21 : vector<8x8xf32>
    %23 = tpu.transpose %22, [1, 0] : vector<8x8xf32> -> vector<8x8xf32>
    %cst_9 = arith.constant dense<0.000000e+00> : vector<8x8xf32>
    %24 = tpu.matmul %16, %23, %cst_9 {dimension_numbers = #tpu.dot_dimension_numbers<[1], [0], [0], [1], [0, 0, 1, 1], [], []>} : vector<8x8xf32>, vector<8x8xf32>, vector<8x8xf32> -> vector<8x8xf32>
    %cst_10 = arith.constant dense<0xFF800000> : vector<8xf32>
    %25 = vector.multi_reduction <maximumf>, %24, %cst_10 [1] : vector<8x8xf32> to vector<8xf32>
    %26 = vector.shape_cast %25 : vector<8xf32> to vector<8x1xf32>
    %27 = vector.broadcast %26 : vector<8x1xf32> to vector<8x8xf32>
    %28 = arith.subf %24, %27 : vector<8x8xf32>
    %29 = math.exp %28 : vector<8x8xf32>
    %cst_11 = arith.constant dense<0.000000e+00> : vector<8xf32>
    %30 = vector.multi_reduction <add>, %29, %cst_11 [1] : vector<8x8xf32> to vector<8xf32>
    %31 = vector.shape_cast %30 : vector<8xf32> to vector<8x1xf32>
    %32 = tpu.reciprocal %31 {approx = true} : vector<8x1xf32> -> vector<8x1xf32>
    %33 = vector.broadcast %32 : vector<8x1xf32> to vector<8x8xf32>
    %34 = arith.mulf %29, %33 : vector<8x8xf32>
    %cst_12 = arith.constant dense<0.000000e+00> : vector<8x8xf32>
    %35 = tpu.matmul %34, %8, %cst_12 {dimension_numbers = #tpu.dot_dimension_numbers<[1], [0], [0], [1], [0, 0, 1, 1], [], []>} : vector<8x8xf32>, vector<8x8xf32>, vector<8x8xf32> -> vector<8x8xf32>
    %36 = vector.extract_strided_slice %3 {offsets = [0, 8], sizes = [8, 8], strides = [1, 1]} : vector<8x96xf32> to vector<8x8xf32>
    %37 = vector.extract_strided_slice %3 {offsets = [0, 40], sizes = [8, 8], strides = [1, 1]} : vector<8x96xf32> to vector<8x8xf32>
    %38 = vector.extract_strided_slice %3 {offsets = [0, 72], sizes = [8, 8], strides = [1, 1]} : vector<8x96xf32> to vector<8x8xf32>
    %39 = vector.extract_strided_slice %36 {offsets = [0, 4], sizes = [8, 4], strides = [1, 1]} : vector<8x8xf32> to vector<8x4xf32>
    %40 = vector.extract_strided_slice %36 {offsets = [0, 0], sizes = [8, 4], strides = [1, 1]} : vector<8x8xf32> to vector<8x4xf32>
    %41 = tpu.concatenate %39, %40 in 1 : vector<8x4xf32>, vector<8x4xf32> -> vector<8x8xf32>
    %42 = arith.mulf %36, %4 : vector<8x8xf32>
    %43 = arith.mulf %41, %5 : vector<8x8xf32>
    %44 = arith.addf %42, %43 : vector<8x8xf32>
    %cst_13 = arith.constant 0.353553385 : f32
    %45 = vector.broadcast %cst_13 : f32 to vector<8x8xf32>
    %46 = arith.mulf %44, %45 : vector<8x8xf32>
    %47 = vector.extract_strided_slice %37 {offsets = [0, 4], sizes = [8, 4], strides = [1, 1]} : vector<8x8xf32> to vector<8x4xf32>
    %48 = vector.extract_strided_slice %37 {offsets = [0, 0], sizes = [8, 4], strides = [1, 1]} : vector<8x8xf32> to vector<8x4xf32>
    %49 = tpu.concatenate %47, %48 in 1 : vector<8x4xf32>, vector<8x4xf32> -> vector<8x8xf32>
    %50 = arith.mulf %37, %4 : vector<8x8xf32>
    %51 = arith.mulf %49, %5 : vector<8x8xf32>
    %52 = arith.addf %50, %51 : vector<8x8xf32>
    %53 = tpu.transpose %52, [1, 0] : vector<8x8xf32> -> vector<8x8xf32>
    %cst_14 = arith.constant dense<0.000000e+00> : vector<8x8xf32>
    %54 = tpu.matmul %46, %53, %cst_14 {dimension_numbers = #tpu.dot_dimension_numbers<[1], [0], [0], [1], [0, 0, 1, 1], [], []>} : vector<8x8xf32>, vector<8x8xf32>, vector<8x8xf32> -> vector<8x8xf32>
    %cst_15 = arith.constant dense<0xFF800000> : vector<8xf32>
    %55 = vector.multi_reduction <maximumf>, %54, %cst_15 [1] : vector<8x8xf32> to vector<8xf32>
    %56 = vector.shape_cast %55 : vector<8xf32> to vector<8x1xf32>
    %57 = vector.broadcast %56 : vector<8x1xf32> to vector<8x8xf32>
    %58 = arith.subf %54, %57 : vector<8x8xf32>
    %59 = math.exp %58 : vector<8x8xf32>
    %cst_16 = arith.constant dense<0.000000e+00> : vector<8xf32>
    %60 = vector.multi_reduction <add>, %59, %cst_16 [1] : vector<8x8xf32> to vector<8xf32>
    %61 = vector.shape_cast %60 : vector<8xf32> to vector<8x1xf32>
    %62 = tpu.reciprocal %61 {approx = true} : vector<8x1xf32> -> vector<8x1xf32>
    %63 = vector.broadcast %62 : vector<8x1xf32> to vector<8x8xf32>
    %64 = arith.mulf %59, %63 : vector<8x8xf32>
    %cst_17 = arith.constant dense<0.000000e+00> : vector<8x8xf32>
    %65 = tpu.matmul %64, %38, %cst_17 {dimension_numbers = #tpu.dot_dimension_numbers<[1], [0], [0], [1], [0, 0, 1, 1], [], []>} : vector<8x8xf32>, vector<8x8xf32>, vector<8x8xf32> -> vector<8x8xf32>
    %66 = vector.extract_strided_slice %3 {offsets = [0, 16], sizes = [8, 8], strides = [1, 1]} : vector<8x96xf32> to vector<8x8xf32>
    %67 = vector.extract_strided_slice %3 {offsets = [0, 48], sizes = [8, 8], strides = [1, 1]} : vector<8x96xf32> to vector<8x8xf32>
    %68 = vector.extract_strided_slice %3 {offsets = [0, 80], sizes = [8, 8], strides = [1, 1]} : vector<8x96xf32> to vector<8x8xf32>
    %69 = vector.extract_strided_slice %66 {offsets = [0, 4], sizes = [8, 4], strides = [1, 1]} : vector<8x8xf32> to vector<8x4xf32>
    %70 = vector.extract_strided_slice %66 {offsets = [0, 0], sizes = [8, 4], strides = [1, 1]} : vector<8x8xf32> to vector<8x4xf32>
    %71 = tpu.concatenate %69, %70 in 1 : vector<8x4xf32>, vector<8x4xf32> -> vector<8x8xf32>
    %72 = arith.mulf %66, %4 : vector<8x8xf32>
    %73 = arith.mulf %71, %5 : vector<8x8xf32>
    %74 = arith.addf %72, %73 : vector<8x8xf32>
    %cst_18 = arith.constant 0.353553385 : f32
    %75 = vector.broadcast %cst_18 : f32 to vector<8x8xf32>
    %76 = arith.mulf %74, %75 : vector<8x8xf32>
    %77 = vector.extract_strided_slice %67 {offsets = [0, 4], sizes = [8, 4], strides = [1, 1]} : vector<8x8xf32> to vector<8x4xf32>
    %78 = vector.extract_strided_slice %67 {offsets = [0, 0], sizes = [8, 4], strides = [1, 1]} : vector<8x8xf32> to vector<8x4xf32>
    %79 = tpu.concatenate %77, %78 in 1 : vector<8x4xf32>, vector<8x4xf32> -> vector<8x8xf32>
    %80 = arith.mulf %67, %4 : vector<8x8xf32>
    %81 = arith.mulf %79, %5 : vector<8x8xf32>
    %82 = arith.addf %80, %81 : vector<8x8xf32>
    %83 = tpu.transpose %82, [1, 0] : vector<8x8xf32> -> vector<8x8xf32>
    %cst_19 = arith.constant dense<0.000000e+00> : vector<8x8xf32>
    %84 = tpu.matmul %76, %83, %cst_19 {dimension_numbers = #tpu.dot_dimension_numbers<[1], [0], [0], [1], [0, 0, 1, 1], [], []>} : vector<8x8xf32>, vector<8x8xf32>, vector<8x8xf32> -> vector<8x8xf32>
    %cst_20 = arith.constant dense<0xFF800000> : vector<8xf32>
    %85 = vector.multi_reduction <maximumf>, %84, %cst_20 [1] : vector<8x8xf32> to vector<8xf32>
    %86 = vector.shape_cast %85 : vector<8xf32> to vector<8x1xf32>
    %87 = vector.broadcast %86 : vector<8x1xf32> to vector<8x8xf32>
    %88 = arith.subf %84, %87 : vector<8x8xf32>
    %89 = math.exp %88 : vector<8x8xf32>
    %cst_21 = arith.constant dense<0.000000e+00> : vector<8xf32>
    %90 = vector.multi_reduction <add>, %89, %cst_21 [1] : vector<8x8xf32> to vector<8xf32>
    %91 = vector.shape_cast %90 : vector<8xf32> to vector<8x1xf32>
    %92 = tpu.reciprocal %91 {approx = true} : vector<8x1xf32> -> vector<8x1xf32>
    %93 = vector.broadcast %92 : vector<8x1xf32> to vector<8x8xf32>
    %94 = arith.mulf %89, %93 : vector<8x8xf32>
    %cst_22 = arith.constant dense<0.000000e+00> : vector<8x8xf32>
    %95 = tpu.matmul %94, %68, %cst_22 {dimension_numbers = #tpu.dot_dimension_numbers<[1], [0], [0], [1], [0, 0, 1, 1], [], []>} : vector<8x8xf32>, vector<8x8xf32>, vector<8x8xf32> -> vector<8x8xf32>
    %96 = vector.extract_strided_slice %3 {offsets = [0, 24], sizes = [8, 8], strides = [1, 1]} : vector<8x96xf32> to vector<8x8xf32>
    %97 = vector.extract_strided_slice %3 {offsets = [0, 56], sizes = [8, 8], strides = [1, 1]} : vector<8x96xf32> to vector<8x8xf32>
    %98 = vector.extract_strided_slice %3 {offsets = [0, 88], sizes = [8, 8], strides = [1, 1]} : vector<8x96xf32> to vector<8x8xf32>
    %99 = vector.extract_strided_slice %96 {offsets = [0, 4], sizes = [8, 4], strides = [1, 1]} : vector<8x8xf32> to vector<8x4xf32>
    %100 = vector.extract_strided_slice %96 {offsets = [0, 0], sizes = [8, 4], strides = [1, 1]} : vector<8x8xf32> to vector<8x4xf32>
    %101 = tpu.concatenate %99, %100 in 1 : vector<8x4xf32>, vector<8x4xf32> -> vector<8x8xf32>
    %102 = arith.mulf %96, %4 : vector<8x8xf32>
    %103 = arith.mulf %101, %5 : vector<8x8xf32>
    %104 = arith.addf %102, %103 : vector<8x8xf32>
    %cst_23 = arith.constant 0.353553385 : f32
    %105 = vector.broadcast %cst_23 : f32 to vector<8x8xf32>
    %106 = arith.mulf %104, %105 : vector<8x8xf32>
    %107 = vector.extract_strided_slice %97 {offsets = [0, 4], sizes = [8, 4], strides = [1, 1]} : vector<8x8xf32> to vector<8x4xf32>
    %108 = vector.extract_strided_slice %97 {offsets = [0, 0], sizes = [8, 4], strides = [1, 1]} : vector<8x8xf32> to vector<8x4xf32>
    %109 = tpu.concatenate %107, %108 in 1 : vector<8x4xf32>, vector<8x4xf32> -> vector<8x8xf32>
    %110 = arith.mulf %97, %4 : vector<8x8xf32>
    %111 = arith.mulf %109, %5 : vector<8x8xf32>
    %112 = arith.addf %110, %111 : vector<8x8xf32>
    %113 = tpu.transpose %112, [1, 0] : vector<8x8xf32> -> vector<8x8xf32>
    %cst_24 = arith.constant dense<0.000000e+00> : vector<8x8xf32>
    %114 = tpu.matmul %106, %113, %cst_24 {dimension_numbers = #tpu.dot_dimension_numbers<[1], [0], [0], [1], [0, 0, 1, 1], [], []>} : vector<8x8xf32>, vector<8x8xf32>, vector<8x8xf32> -> vector<8x8xf32>
    %cst_25 = arith.constant dense<0xFF800000> : vector<8xf32>
    %115 = vector.multi_reduction <maximumf>, %114, %cst_25 [1] : vector<8x8xf32> to vector<8xf32>
    %116 = vector.shape_cast %115 : vector<8xf32> to vector<8x1xf32>
    %117 = vector.broadcast %116 : vector<8x1xf32> to vector<8x8xf32>
    %118 = arith.subf %114, %117 : vector<8x8xf32>
    %119 = math.exp %118 : vector<8x8xf32>
    %cst_26 = arith.constant dense<0.000000e+00> : vector<8xf32>
    %120 = vector.multi_reduction <add>, %119, %cst_26 [1] : vector<8x8xf32> to vector<8xf32>
    %121 = vector.shape_cast %120 : vector<8xf32> to vector<8x1xf32>
    %122 = tpu.reciprocal %121 {approx = true} : vector<8x1xf32> -> vector<8x1xf32>
    %123 = vector.broadcast %122 : vector<8x1xf32> to vector<8x8xf32>
    %124 = arith.mulf %119, %123 : vector<8x8xf32>
    %cst_27 = arith.constant dense<0.000000e+00> : vector<8x8xf32>
    %125 = tpu.matmul %124, %98, %cst_27 {dimension_numbers = #tpu.dot_dimension_numbers<[1], [0], [0], [1], [0, 0, 1, 1], [], []>} : vector<8x8xf32>, vector<8x8xf32>, vector<8x8xf32> -> vector<8x8xf32>
    %126 = tpu.concatenate %35, %65, %95, %125 in 1 : vector<8x8xf32>, vector<8x8xf32>, vector<8x8xf32>, vector<8x8xf32> -> vector<8x32xf32>
    %c0_28 = arith.constant 0 : index
    %c0_29 = arith.constant 0 : index
    %127 = vector.load %arg3[%c0_28, %c0_29] : memref<32x32xf32, #tpu.memory_space<vmem>>, vector<32x32xf32>
    %cst_30 = arith.constant dense<0.000000e+00> : vector<8x32xf32>
    %128 = tpu.matmul %126, %127, %cst_30 {dimension_numbers = #tpu.dot_dimension_numbers<[1], [0], [0], [1], [0, 0, 1, 1], [], []>} : vector<8x32xf32>, vector<32x32xf32>, vector<8x32xf32> -> vector<8x32xf32>
    %c0_31 = arith.constant 0 : index
    %c0_32 = arith.constant 0 : index
    %c0_33 = arith.constant 0 : index
    %129 = vector.load %arg6[%c0_31, %c0_32, %c0_33] : memref<1x8x32xf32, #tpu.memory_space<vmem>>, vector<1x8x32xf32>
    %130 = vector.shape_cast %129 : vector<1x8x32xf32> to vector<8x32xf32>
    %131 = vector.shape_cast %128 : vector<8x32xf32> to vector<1x8x32xf32>
    tpu.vector_store %arg6[%c0_31, %c0_32, %c0_33], %131 {strides = array<i32>} : memref<1x8x32xf32, #tpu.memory_space<vmem>>, vector<1x8x32xf32>,
    return
  }
  func.func @transform_0(%arg0: i32) -> (i32, i32, i32) {
    %c0_i32 = arith.constant 0 : i32
    %c0_i32_0 = arith.constant 0 : i32
    %c0_i32_1 = arith.constant 0 : i32
    return %arg0, %c0_i32, %c0_i32_0 : i32, i32, i32
  }
  func.func @transform_1(%arg0: i32) -> (i32, i32) {
    %c0_i32 = arith.constant 0 : i32
    %c0_i32_0 = arith.constant 0 : i32
    %c0_i32_1 = arith.constant 0 : i32
    return %c0_i32, %c0_i32_0 : i32, i32
  }
  func.func @transform_2(%arg0: i32) -> (i32, i32) {
    %c0_i32 = arith.constant 0 : i32
    %c0_i32_0 = arith.constant 0 : i32
    %c0_i32_1 = arith.constant 0 : i32
    return %c0_i32, %c0_i32_0 : i32, i32
  }
  func.func @transform_3(%arg0: i32) -> (i32, i32) {
    %c0_i32 = arith.constant 0 : i32
    %c0_i32_0 = arith.constant 0 : i32
    %c0_i32_1 = arith.constant 0 : i32
    return %c0_i32, %c0_i32_0 : i32, i32
  }
  func.func @transform_4(%arg0: i32) -> (i32, i32) {
    %c0_i32 = arith.constant 0 : i32
    %c0_i32_0 = arith.constant 0 : i32
    %c0_i32_1 = arith.constant 0 : i32
    return %c0_i32, %c0_i32_0 : i32, i32
  }
  func.func @transform_5(%arg0: i32) -> (i32, i32, i32) {
    %c0_i32 = arith.constant 0 : i32
    %c0_i32_0 = arith.constant 0 : i32
    %c0_i32_1 = arith.constant 0 : i32
    return %arg0, %c0_i32, %c0_i32_0 : i32, i32, i32
  }
}

</mosaic_0001>

<bundles_post_ra>
// kernel: tpu_custom_call.1
= control target key start
LH: loop header
LB: loop body
LE: loop exit
PB: predicated region body
PF: predicated region fallthrough
CT: control target
= control target key end

     0   :  { %10 = vsyncpa [#allocation3], 0  ;;  %s2254_s0 = inlined_call_operand.hbm [shape: f32[2,8,32], index: 0, kind: input, shape index: {}]   ;;  %s2255_s1 = inlined_call_operand.hbm [shape: f32[32,96], index: 1, kind: input, shape index: {}]   ;;  %s2256_s2 = inlined_call_operand.hbm [shape: f32[32,32], index: 2, kind: input, shape index: {}]   ;;  %s2257_s3 = inlined_call_operand.vmem [shape: f32[8,8], index: 3, kind: input, shape index: {}]   ;;  %s2258_s4 = inlined_call_operand.hbm [shape: f32[8,8], index: 4, kind: input, shape index: {}]   ;;  %s2259_s5 = inlined_call_operand.hbm [shape: f32[2,8,32], index: 5, kind: output, shape index: {}]  }
   0x1   :  { %12 = vsyncpa [#allocation3 + $0x1], 0 }
   0x2   :  { %13 = vsyncpa [#allocation6], 0 }
   0x3   :  { %14 = vsyncpa [#allocation9], 0 }
   0x4   :  { %15 = vsyncpa [#allocation4], 0 }
   0x5   :  { %17 = vsyncpa [#allocation4 + $0x1], 0  ;;  %s1861_s18 = smov 0   ;;  %s1863_s19 = smov 0  }
   0x6   :  { %s1865_s20 = smov 0   ;;  %s1867_s21 = smov 0  }
   0x7 LB: > { %s1882_s22 = sadd.s32 4294967295, %s1795_s21   ;;  %s1353_s23 = sadd.s32 4294967294, %s1795_s21   ;;  %s1795_s21 = sphi %s1867_s21, %s2282_s21   ;;  %s1791_s20 = sphi %s1865_s20, %s2281_s20   ;;  %s1787_s19 = sphi %s1863_s19, %s2280_s19   ;;  %s1783_s18 = sphi %s1861_s18, %s2279_s18  }
   0x8   : > { %p43_p0 = scmp.ne.s32.totalorder %s1787_s19, %s1783_s18  ;;  %p2260_p1 = scmp.eq.s32.totalorder %s1882_s22, 0 }
   0x9   : > { %p157_p3 = scmp.eq.s32.totalorder %s1353_s23, 1  ;;  %p1354_p5 = scmp.ge.s32.totalorder %s1795_s21, 1 }
   0xa   : > { %p1891_p4 = por %p2260_p1, %p43_p0  ;;  %p164_p7 = scmp.lt.s32.totalorder %s1795_s21, 3 }
   0xb   : > { %p1896_p6 = por %p157_p3, %p43_p0  ;;  %s1797_s27 = smov [#allocation5]  }
   0xc   : > { %s2263_s24 = scalar_select %p1891_p4, 1, 0 }
   0xd   : > { %s2264_s25 = scalar_select %p1896_p6, 1, 0 }
   0xe   : > { %p1901_p8 = pnand %p1354_p5, %p164_p7  ;;  %s176_s28 = sshll.u32 %s1797_s27, 4  ;;  %s1905_s28 = int_to_ptr.vmem [resolvable:$true] %s176_s28 }
   0xf   : > { %s1798_s30 = smov [#allocation7]   ;;  %s1799_s7 = smov [#allocation8]  }
  0x10   : > { %s2265_s26 = scalar_select %p1901_p8, 1, 0 }
  0x11   : > { %p1501_p9 = pneg %p1901_p8  ;;  %s189_s6 = sshll.u32 %s1798_s30, 4  ;;  %s1916_s6 = int_to_ptr.vmem [resolvable:$true] %s189_s6 }
  0x12   : > { %s1918_s8 = sshll.u32 %s1799_s7, 4  ;;  %s1607_s11 = scalar_lea.hbm %s2255_s1, 512  ;;  %s207_s8 = int_to_ptr.vmem [resolvable:$true] %s1918_s8 }
  0x13   : > { %p1912_p11 = pnand %p1501_p9, %p2260_p1  ;;  %p1608_p12 = scmp.ne.s32.totalorder %s2255_s1, %s1607_s11 }
  0x14   : > { %p1614_p5 = scmp.lt.u32.totalorder %s1607_s11, %s2255_s1 }
  0x15   : > { %p1928_p13 = pneg %p1912_p11 }
  0x17   : > { %p1610_p0 = pnand %p1928_p13, %p1608_p12 }
  0x19   : > { %p1611_p3 = pneg %p1610_p0 }
  0x1b   : > { %p1616_p7 = pnand %p1614_p5, %p1611_p3 }
  0x1d   : > { %1619 = shalt.err (!%p1616_p7)
}
  0x1e   : > { %s1620_s17 = scalar_lea.vmem %s1905_s28, 512  ;;  %p1628_p2 = scmp.lt.s32.totalorder %s1905_s28, %s1905_s28 }
  0x1f   : > { %p1621_p9 = scmp.ne.s32.totalorder %s1905_s28, %s1620_s17  ;;  %p1629_p6 = scmp.lt.s32.totalorder %s1620_s17, %s1620_s17 }
  0x21   : > { %p1623_p10 = pnand %p1621_p9, %p1928_p13  ;;  %p1630_p12 = por %p1629_p6, %p1628_p2 }
  0x23   : > { %p1624_p1 = pneg %p1623_p10 }
  0x25   : > { %p1631_p0 = pnand %p1630_p12, %p1624_p1 }
  0x27   : > { %1634 = shalt.err (!%p1631_p0)
}
  0x28   : > { %s1800_s23 = smov 128   ;;  %s1801_s27 = smov 8  }
  0x29   : > { %1504 = dma.hbm_to_vmem [thread:$0]  (!%p1912_p11), %s2255_s1, 512, %s1905_s28, [#allocation6], %s1800_s23, %s1800_s23, %s1801_s27  }
  0x2a   : > { %s1635_s11 = scalar_lea.hbm %s2256_s2, 512 }
  0x2b   : > { %p1636_p2 = scmp.ne.s32.totalorder %s2256_s2, %s1635_s11  ;;  %p1642_p10 = scmp.lt.u32.totalorder %s1635_s11, %s2256_s2 }
  0x2d   : > { %p1638_p1 = pnand %p1636_p2, %p1928_p13 }
  0x2f   : > { %p1639_p6 = pneg %p1638_p1 }
  0x31   : > { %p1644_p3 = pnand %p1642_p10, %p1639_p6 }
  0x33   : > { %1647 = shalt.err (!%p1644_p3)
}
  0x34   : > { %s1648_s28 = scalar_lea.vmem %s1916_s6, 512  ;;  %p1656_p12 = scmp.lt.s32.totalorder %s1916_s6, %s1916_s6 }
  0x35   : > { %p1649_p5 = scmp.ne.s32.totalorder %s1916_s6, %s1648_s28  ;;  %p1657_p0 = scmp.lt.s32.totalorder %s1648_s28, %s1648_s28 }
  0x37   : > { %p1651_p7 = pnand %p1649_p5, %p1928_p13  ;;  %p1658_p2 = por %p1657_p0, %p1656_p12 }
  0x39   : > { %p1652_p9 = pneg %p1651_p7 }
  0x3b   : > { %p1659_p1 = pnand %p1658_p2, %p1652_p9 }
  0x3d   : > { %1662 = shalt.err (!%p1659_p1)
}
  0x3e   : > { %1507 = dma.hbm_to_vmem [thread:$0]  (!%p1912_p11), %s2256_s2, 512, %s1916_s6, [#allocation6], %s1800_s23, %s1800_s23, %s1801_s27  }
  0x3f   : > { %s1663_s10 = scalar_lea.hbm %s2258_s4, 128 }
  0x40   : > { %p1664_p6 = scmp.ne.s32.totalorder %s2258_s4, %s1663_s10  ;;  %p1670_p5 = scmp.lt.u32.totalorder %s1663_s10, %s2258_s4 }
  0x42   : > { %p1666_p10 = pnand %p1664_p6, %p1928_p13 }
  0x44   : > { %p1667_p3 = pneg %p1666_p10 }
  0x46   : > { %p1672_p7 = pnand %p1670_p5, %p1667_p3 }
  0x48   : > { %1675 = shalt.err (!%p1672_p7)
}
  0x49   : > { %s1676_s16 = scalar_lea.vmem %s207_s8, 128  ;;  %p1684_p2 = scmp.lt.s32.totalorder %s207_s8, %s207_s8 }
  0x4a   : > { %p1677_p9 = scmp.ne.s32.totalorder %s207_s8, %s1676_s16  ;;  %p1685_p1 = scmp.lt.s32.totalorder %s1676_s16, %s1676_s16 }
  0x4c   : > { %p1679_p12 = pnand %p1677_p9, %p1928_p13  ;;  %p1686_p4 = por %p1685_p1, %p1684_p2 }
  0x4e   : > { %p1680_p0 = pneg %p1679_p12 }
  0x50   : > { %p1687_p8 = pnand %p1686_p4, %p1680_p0 }
  0x52   : > { %1690 = shalt.err (!%p1687_p8)
}
  0x53   : > { %1510 = dma.hbm_to_vmem [thread:$0]  (!%p1912_p11), %s2258_s4, 128, %s207_s8, [#allocation9]  }
  0x54   : > { %s1992_s14 = sadd.s32 1, %s1795_s21   ;;  %s30_s29 = sadd.s32 1, %s1791_s20 }
  0x55   : > { %s27_s27 = ssub.s32 %s1795_s21, %s1992_s14  ;;  %p37_p8 = scmp.ne.s32.totalorder %s1791_s20, %s1787_s19 }
  0x56   : > { %p28_p4 = scmp.eq.s32.totalorder %s27_s27, 0  ;;  %p38_p13 = scmp.eq.s32.totalorder %s1795_s21, 0 }
  0x57   : > { %p1522_p6 = scmp.lt.s32.totalorder %s1795_s21, 2  ;;  %p2268_p3 = scmp.eq.s32.totalorder %s1882_s22, 1 }
  0x58   : > { %s2002_s28 = scalar_select %p28_p4, %s1791_s20, %s30_s29  }
  0x59   : > { %p39_p10 = por %p38_p13, %p37_p8  ;;  %p2006_p5 = por %p2268_p3, %p37_p8 }
  0x5a   : > { %s217_s30 = sand.u32 1, %s1791_s20   ;;  %s1360_s7 = sshll.u32 %s1795_s21, 7 }
  0x5b   : > { %s1359_s8 = sshll.u32 %s217_s30, 3  ;;  %s2015_s11 = scalar_lea.hbm %s2254_s0, %s1360_s7 }
  0x5c   : > { %s221_s12 = scalar_lea.vmem [#allocation2], %s1359_s8  ;;  %p2017_p11 = pnand %p1522_p6, %p39_p10 }
  0x5d   : > { %s228_s13 = sshll.u32 %s221_s12, 4  ;;  %s218_s16 = scalar_lea.sflag [#allocation3], %s217_s30  ;;  %s2021_s13 = int_to_ptr.vmem [resolvable:$true] %s228_s13 }
  0x5e   : > { %s1691_s6 = scalar_lea.hbm %s2015_s11, 128  ;;  %p1693_p9 = pneg %p2017_p11 }
  0x5f   : > { %p1692_p7 = scmp.ne.s32.totalorder %s2015_s11, %s1691_s6  ;;  %s1696_s29 = scalar_lea.hbm %s2254_s0, 256 }
  0x60   : > { %p1697_p2 = scmp.lt.u32.totalorder %s2015_s11, %s2254_s0  ;;  %p1698_p1 = scmp.lt.u32.totalorder %s1696_s29, %s1691_s6 }
  0x61   : > { %p1694_p12 = pnand %p1693_p9, %p1692_p7  ;;  %p1700_p8 = scmp.lt.u32.totalorder %s1691_s6, %s2015_s11 }
  0x62   : > { %p1699_p4 = por %p1698_p1, %p1697_p2 }
  0x63   : > { %p1695_p0 = pneg %p1694_p12 }
  0x64   : > { %p1701_p13 = por %p1700_p8, %p1699_p4 }
  0x66   : > { %p1702_p6 = pnand %p1701_p13, %p1695_p0 }
  0x68   : > { %1705 = shalt.err (!%p1702_p6)
}
  0x69   : > { %s1706_s30 = scalar_lea.vmem %s2021_s13, 128  ;;  %s1802_s9 = smov [#allocation2]  }
  0x6a   : > { %p1707_p10 = scmp.ne.s32.totalorder %s2021_s13, %s1706_s30  ;;  %s1711_s10 = sshll.u32 %s1802_s9, 4  ;;  %s1712_s10 = int_to_ptr.vmem [resolvable:$false] %s1711_s10 }
  0x6b   : > { %s1713_s12 = scalar_lea.vmem %s1712_s10, 256  ;;  %p1714_p12 = scmp.lt.s32.totalorder %s2021_s13, %s1712_s10 }
  0x6c   : > { %p1709_p3 = pnand %p1707_p10, %p1693_p9  ;;  %p1715_p2 = scmp.lt.s32.totalorder %s1713_s12, %s1706_s30 }
  0x6e   : > { %p1710_p7 = pneg %p1709_p3  ;;  %p1716_p1 = por %p1715_p2, %p1714_p12 }
  0x70   : > { %p1717_p4 = pnand %p1716_p1, %p1710_p7 }
  0x72   : > { %1720 = shalt.err (!%p1717_p4)
}
  0x73   : > { %1514 = dma.hbm_to_vmem [thread:$0]  (!%p2017_p11), %s2015_s11, 128, %s2021_s13, %s218_s16  }
  0x74   : > { %p2271_p0 = scmp.ne.s32.totalorder %s2265_s26, 0 }
  0x75   : > { %s2051_s6 = sand.u32 (!%p2271_p0), 1, %s1787_s19   ;;  %p2272_p9 = scmp.ne.s32.totalorder (!%p2271_p0), %s2263_s24, 0 }
  0x76   : > { %237 = sbr.rel (%p2271_p0) target bundleno = 2342 (0x926), region = 40  ;;  %s1362_s23 = sshll.u32 (!%p2271_p0), %s2051_s6, 3 }
  0x77   : > { %s240_s27 = scalar_lea.sflag (!%p2271_p0), [#allocation3], %s2051_s6  ;;  %s243_s29 = scalar_lea.vmem (!%p2271_p0), [#allocation2], %s1362_s23 }
  0x7d   : > { %1766 = dma.done.wait (%p2272_p9), %s240_s27, 128  }
  0x7e   : > { %1768 = vsyncadd (%p2272_p9), %s240_s27, 4294967168  ;;  %p2273_p11 = scmp.eq.s32.totalorder %s1882_s22, 0 }
  0x80   : > { %1770 = dma.done.wait (%p2273_p11), [#allocation6], 1024   ;;  %p2274_p8 = pmov %p2273_p11 }
  0x82   : > { %1772 = vsyncadd (%p2274_p8), [#allocation6], 4294966272  ;;  %p2275_p13 = pmov %p2274_p8 }
  0x83   : > { %p2276_p6 = pmov %p2274_p8 }
  0x84   : > { %1774 = dma.done.wait (%p2275_p13), [#allocation9], 128  }
  0x85   : > { %1776 = vsyncadd (%p2276_p6), [#allocation9], 4294967168  ;;  %v1803_v0 = vmov 0.0|0.0   ;;  %vm1804_vm0 = vmmov 0   ;;  %v1805_v1 = vmov 0.0   ;;  %v283_v2 = vld [vmem:[#allocation5] sm:$0xff] }
  0x86   : > { %1473 = vmatprep.subr.bf16.mxu0 %v1803_v0  ;;  %1419 = vmatprep.mubr.msk.f32.mxu0 %vm1804_vm0, %v1805_v1  ;;  %v284_v3 = vld [vmem:[#allocation5 + $0x8] sm:$0xff]  ;;  %v285_v4 = vld [vmem:[#allocation5 + $0x10] sm:$0xff]  ;;  %v286_v6 = vld [vmem:[#allocation5 + $0x18] sm:$0xff]  ;;  %s1806_s11 = smov 32   ;;  %vm287_vm1 = vcmask 261120   ;;  %s1807_s13 = smov 92  }
  0x87   : > { %1422 = vmatprep.subr.mxu1 %v1805_v1  ;;  %1424 = vmatprep.mubr.msk.f32.mxu1 %vm1804_vm0, %v1805_v1  ;;  %v1474_v5 = vpack.c.bf16 %v284_v3, %v283_v2  ;;  %v2078_v7 = vld [vmem:[%s2257_s3] sm:$0xff]  ;;  %v1477_v8 = vpack.c.bf16 %v286_v6, %v285_v4  ;;  %s1808_s15 = smov 100   ;;  %s1809_s16 = smov 124   ;;  %vm370_vm2 = vcmask 31744   ;;  %v2091_v13 = vld [vmem:[#allocation8] sm:$0xff]  ;;  %vm397_vm3 = vcmask 64512  }
  0x88   : > { %384 = vrot.lane.b32.xlu1 %v2078_v7, %s1806_s11  ;;  %v282_v9 = vld [vmem:[%s243_s29] sm:$0xff]  ;;  %s1810_s7 = smov 4   ;;  %s1811_s8 = smov 84   ;;  %vm1158_vm4 = vcmask 130048   ;;  %vm1160_vm5 = vcmask 195584  }
  0x89   : > { %1475 = vmatpush3.bf16.msra.mxu0 %v1474_v5  ;;  %s1812_s30 = smov 76   ;;  %s1813_s9 = smov 108  }
  0x8a   : > { %1476 = vmatprep.subr.bf16.mxu0 %v1803_v0  ;;  %s1814_s10 = smov 68   ;;  %s1815_s12 = smov 40  }
  0x8b   : > { %s1816_s27 = smov 8   ;;  %s1817_s29 = smov 96  }
  0x8c   : > { %s1818_s24 = smov 116   ;;  %s1819_s26 = smov 48  }
  0x8d   : > { %1478 = vmatpush3.bf16.msra.mxu0 %v1477_v8 }
  0x8e   : > { %1442 = vmatprep.subr.mxu0 %v1805_v1 }
  0x90   : > { %1420 = vmatmul.mubr.msk.f32.vlgmr.msra.gmra.mrb[0].mxu0 %vm287_vm1, %v282_v9 }
  0x91   : > { %1444 = vmatprep.mubr.msk.f32.mxu0 %vm1804_vm0, %v1805_v1 }
  0xfa   : > { %v385_v17 = vpop.permute.xlu1 %384 }
 0x163   : > { %v2086_v10 = vpop.f32.mrb[0].mxu0 }
 0x164   : > { %376 = vrot.lane.b32.xlu0 %v2086_v10, %s1807_s13  ;;  %v1421_v11 = vpop.f32.mrb[1].mxu0  ;;  %v387_v18 = vmul.f32 %v385_v17, %v2086_v10  ;;  %v372_v24 = vmul.f32 %v2078_v7, %v2086_v10  ;;  %s1821_s13 = smov 56  }
 0x168   : > { %379 = vrot.lane.b32.xlu0 %v2086_v10, %s1808_s15  ;;  %s1822_s15 = smov 24  }
 0x16c   : > { %364 = vrot.lane.b32.xlu0 %v2086_v10, %s1809_s16  ;;  %s1823_s16 = smov 64  }
 0x1d6   : > { %v377_v12 = vpop.permute.xlu0 %376 }
 0x1da   : > { %v2093_v14 = vpop.permute.xlu0 %379 }
 0x1db   : > { %v382_v15 = vsel %vm370_vm2, %v377_v12, %v2093_v14 }
 0x1dc   : > { %v388_v16 = vmul.f32 %v382_v15, %v2091_v13 }
 0x1de   : > { %390 = vrot.lane.b32.xlu1 %v388_v16, %s1806_s11  ;;  %v365_v21 = vpop.permute.xlu0 %364  ;;  %s1820_s11 = smov 16  }
 0x1e2   : > { %367 = vrot.lane.b32.xlu1 %v2086_v10, %s1810_s7  ;;  %s1824_s7 = smov 88  }
 0x1e6   : > { %575 = vrot.lane.b32.xlu1 %v2086_v10, %s1811_s8  ;;  %s1825_s8 = smov 120  }
 0x1ea   : > { %771 = vrot.lane.b32.xlu1 %v2086_v10, %s1812_s30  ;;  %s1826_s30 = smov 80  }
 0x1ee   : > { %756 = vrot.lane.b32.xlu1 %v2086_v10, %s1813_s9  ;;  %s1827_s9 = smov 112  }
 0x1f2   : > { %964 = vrot.lane.b32.xlu1 %v2086_v10, %s1814_s10  ;;  %s1828_s10 = smov 72  }
 0x1f6   : > { %579 = vrot.lane.b32.xlu1 %v2078_v7, %s1815_s12 }
 0x1fa   : > { %564 = vrot.lane.b32.xlu1 %v2078_v7, %s1816_s27 }
 0x250   : > { %v391_v19 = vpop.permute.xlu1 %390 }
 0x251   : > { %v393_v20 = vadd.f32 %v391_v19, %v387_v18 }
 0x253   : > { %395 = vrot.lane.b32.xlu0 %v393_v20, %s1817_s29  ;;  %s1829_s29 = smov 104  }
 0x254   : > { %v368_v22 = vpop.permute.xlu1 %367 }
 0x255   : > { %v371_v23 = vsel %vm370_vm2, %v365_v21, %v368_v22 }
 0x256   : > { %v373_v25 = vmul.f32 %v371_v23, %v2091_v13 }
 0x257   : > { %560 = vrot.lane.b32.xlu0 %v2086_v10, %s1818_s24 }
 0x258   : > { %v374_v26 = vadd.f32 %v373_v25, %v372_v24  ;;  %v576_v27 = vpop.permute.xlu1 %575 }
 0x259   : > { %v578_v28 = vsel %vm370_vm2, %v576_v27, %v377_v12 }
 0x25a   : > { %v583_v29 = vmul.f32 %v578_v28, %v2091_v13  ;;  %v375_v33 = vmul.f32 0.35355338, %v374_v26 }
 0x25c   : > { %585 = vrot.lane.b32.xlu1 %v583_v29, %s1815_s12  ;;  %v772_v30 = vpop.permute.xlu1 %771 }
 0x25d   : > { %v774_v31 = vsel %vm370_vm2, %v772_v30, %v576_v27 }
 0x25e   : > { %v779_v50 = vmul.f32 %v774_v31, %v2091_v13 }
 0x260   : > { %v757_v37 = vpop.permute.xlu1 %756 }
 0x261   : > { %v952_v43 = vsel %vm370_vm2, %v2093_v14, %v757_v37 }
 0x262   : > { %v957_v44 = vmul.f32 %v952_v43, %v2091_v13 }
 0x264   : > { %v965_v40 = vpop.permute.xlu1 %964 }
 0x265   : > { %v967_v41 = vsel %vm370_vm2, %v965_v40, %v772_v30 }
 0x266   : > { %v972_v42 = vmul.f32 %v967_v41, %v2091_v13 }
 0x268   : > { %v580_v48 = vpop.permute.xlu1 %579 }
 0x269   : > { %v582_v53 = vmul.f32 %v580_v48, %v2086_v10 }
 0x26c   : > { %v565_v49 = vpop.permute.xlu1 %564 }
 0x26d   : > { %v567_v54 = vmul.f32 %v565_v49, %v2086_v10 }
 0x2c5   : > { %v396_v32 = vpop.permute.xlu0 %395 }
 0x2c6   : > { %1423 = vmatpush3.xpose.msk.msra.mxu1 %vm397_vm3, %v396_v32 }
 0x2c7   : > { %1427 = vmatprep.subr.mxu1 %v1805_v1 }
 0x2c9   : > { %v561_v34 = vpop.permute.xlu0 %560  ;;  %1425 = vmatmul.mubr.msk.f32.vlgmr.msra.gmra.mrb[0].mxu1 %vm397_vm3, %v375_v33 }
 0x2ca   : > { %v563_v35 = vsel %vm370_vm2, %v561_v34, %v365_v21  ;;  %1429 = vmatprep.mubr.msk.f32.mxu1 %vm1804_vm0, %v1805_v1  ;;  %v759_v38 = vsel %vm370_vm2, %v757_v37, %v561_v34 }
 0x2cb   : > { %v568_v36 = vmul.f32 %v563_v35, %v2091_v13  ;;  %v764_v39 = vmul.f32 %v759_v38, %v2091_v13 }
 0x2cd   : > { %570 = vrot.lane.b32.xlu1 %v568_v36, %s1816_s27 }
 0x2ce   : > { %v586_v51 = vpop.permute.xlu1 %585 }
 0x2cf   : > { %v588_v55 = vadd.f32 %v586_v51, %v582_v53 }
 0x2d1   : > { %775 = vrot.lane.b32.xlu1 %v2078_v7, %s1819_s26 }
 0x2d5   : > { %760 = vrot.lane.b32.xlu1 %v2078_v7, %s1820_s11 }
 0x2d9   : > { %766 = vrot.lane.b32.xlu1 %v764_v39, %s1820_s11 }
 0x2dd   : > { %968 = vrot.lane.b32.xlu1 %v2078_v7, %s1821_s13 }
 0x2e1   : > { %953 = vrot.lane.b32.xlu1 %v2078_v7, %s1822_s15 }
 0x2e5   : > { %974 = vrot.lane.b32.xlu1 %v972_v42, %s1821_s13 }
 0x2e9   : > { %959 = vrot.lane.b32.xlu1 %v957_v44, %s1822_s15 }
 0x33f   : > { %v571_v52 = vpop.permute.xlu1 %570 }
 0x340   : > { %v573_v56 = vadd.f32 %v571_v52, %v567_v54 }
 0x342   : > { %v574_v57 = vmul.f32 0.35355338, %v573_v56 }
 0x343   : > { %v776_v58 = vpop.permute.xlu1 %775 }
 0x344   : > { %v778_v3 = vmul.f32 %v776_v58, %v2086_v10 }
 0x347   : > { %v761_v59 = vpop.permute.xlu1 %760 }
 0x348   : > { %v763_v4 = vmul.f32 %v761_v59, %v2086_v10 }
 0x34b   : > { %v767_v60 = vpop.permute.xlu1 %766 }
 0x34c   : > { %v769_v8 = vadd.f32 %v767_v60, %v763_v4 }
 0x34e   : > { %v770_v12 = vmul.f32 0.35355338, %v769_v8  ;;  %v1164_v8 = vld [vmem:[#allocation7 + $0x10] sm:$0xff] }
 0x34f   : > { %v969_v61 = vpop.permute.xlu1 %968 }
 0x350   : > { %v971_v14 = vmul.f32 %v969_v61, %v2086_v10 }
 0x353   : > { %v954_v62 = vpop.permute.xlu1 %953 }
 0x354   : > { %v956_v15 = vmul.f32 %v954_v62, %v2086_v10 }
 0x357   : > { %v975_v6 = vpop.permute.xlu1 %974 }
 0x358   : > { %v977_v16 = vadd.f32 %v975_v6, %v971_v14  ;;  %v1163_v6 = vld [vmem:[#allocation7 + $0x8] sm:$0xff] }
 0x35b   : > { %v960_v13 = vpop.permute.xlu1 %959 }
 0x35c   : > { %v962_v17 = vadd.f32 %v960_v13, %v956_v15 }
 0x35e   : > { %v963_v20 = vmul.f32 0.35355338, %v962_v17 }
 0x39c   : > { %v469_v45 = vpop.f32.mrb[0].mxu1 }
 0x39d   : > { %v1426_v46 = vpop.f32.mrb[1].mxu1  ;;  %v473_v47 = vsel %vm397_vm3, %v469_v45, -inf }
 0x39e   : > { %474 = vmax.xlane.f32.xlu0 %v473_v47 }
 0x3b4   : > { %781 = vrot.lane.b32.xlu0 %v779_v50, %s1819_s26 }
 0x3b8   : > { %484 = vrot.lane.b32.xlu0 %v2086_v10, %s1823_s16 }
 0x3bc   : > { %593 = vrot.lane.b32.xlu0 %v588_v55, %s1824_s7 }
 0x3c0   : > { %590 = vrot.lane.b32.xlu0 %v574_v57, %s1825_s8 }
 0x42b   : > { %v475_v63 = vpop.xlane.xlu0 %474 }
 0x42c   : > { %v476_v2 = vsub.f32 %v469_v45, %v475_v63 }
 0x42e   : > { %v477_v5 = vmul.f32 1.442695, %v476_v2 }
 0x42f   : > { %v782_v7 = vpop.permute.xlu0 %781 }
 0x430   : > { %1591 = vpow2.f32 %v477_v5  ;;  %v784_v9 = vadd.f32 %v782_v7, %v778_v3  ;;  %v1162_v5 = vld [vmem:[#allocation7] sm:$0xff] }
 0x431   : > { %v1480_v7 = vpack.c.bf16 %v1163_v6, %v1162_v5 }
 0x432   : > { %789 = vrot.lane.b32.xlu0 %v784_v9, %s1826_s30  ;;  %v1165_v9 = vld [vmem:[#allocation7 + $0x18] sm:$0xff] }
 0x433   : > { %v485_v11 = vpop.permute.xlu0 %484 }
 0x434   : > { %1428 = vmatpush3.msra.mxu1 %v485_v11  ;;  %v1483_v11 = vpack.c.bf16 %v1165_v9, %v1164_v8 }
 0x435   : > { %1432 = vmatprep.subr.mxu1 %v1805_v1 }
 0x436   : > { %786 = vrot.lane.b32.xlu0 %v770_v12, %s1827_s9 }
 0x437   : > { %v594_v21 = vpop.permute.xlu0 %593 }
 0x43a   : > { %v1592_v18 = vpop.eup %1591  ;;  %982 = vrot.lane.b32.xlu0 %v977_v16, %s1828_s10 }
 0x43b   : > { %v479_v19 = vsel %vm397_vm3, %v1592_v18, 0.0  ;;  %v591_v22 = vpop.permute.xlu0 %590 }
 0x43c   : > { %480 = vadd.xlane.f32.xlu1 %v479_v19 }
 0x43e   : > { %979 = vrot.lane.b32.xlu0 %v963_v20, %s1829_s29 }
 0x4a4   : > { %v790_v23 = vpop.permute.xlu0 %789 }
 0x4a5   : > { %1443 = vmatpush3.xpose.msk.msra.mxu0 %vm397_vm3, %v790_v23 }
 0x4a6   : > { %1452 = vmatprep.subr.mxu0 %v1805_v1 }
 0x4a8   : > { %v787_v24 = vpop.permute.xlu0 %786 }
 0x4a9   : > { %1445 = vmatmul.mubr.msk.f32.vlgmr.msra.gmra.mrb[2].mxu0 %vm397_vm3, %v787_v24 }
 0x4aa   : > { %1454 = vmatprep.mubr.msk.f32.mxu0 %vm1804_vm0, %v1805_v1 }
 0x4ac   : > { %v983_v25 = vpop.permute.xlu0 %982 }
 0x4ad   : > { %1453 = vmatpush3.xpose.msk.msra.mxu0 %vm397_vm3, %v983_v25 }
 0x4ae   : > { %1479 = vmatprep.subr.bf16.mxu0 %v1803_v0 }
 0x4b0   : > { %v980_v26 = vpop.permute.xlu0 %979 }
 0x4b1   : > { %1455 = vmatmul.mubr.msk.f32.vlgmr.msra.gmra.mrb[4].mxu0 %vm397_vm3, %v980_v26 }
 0x4b2   : > { %1470 = vmatprep.mubr.msk.f32.mxu0 %vm1804_vm0, %v1805_v1  ;;  %1481 = vmatpush3.bf16.msra.mxu0 %v1480_v7 }
 0x4b3   : > { %1482 = vmatprep.subr.bf16.mxu0 %v1803_v0 }
 0x4b6   : > { %1484 = vmatpush3.bf16.msra.mxu0 %v1483_v11 }
 0x4c9   : > { %v481_v27 = vpop.xlane.xlu1 %480 }
 0x4ca   : > { %1593 = vrcp.f32 %v481_v27 }
 0x4d4   : > { %v1594_v28 = vpop.eup %1593 }
 0x4d5   : > { %v483_v29 = vmul.f32 %v1594_v28, %v1592_v18 }
 0x4d7   : > { %1430 = vmatmul.mubr.msk.f32.vlgmr.msra.gmra.mrb[2].mxu1 %vm397_vm3, %v483_v29 }
 0x4d8   : > { %1433 = vmatpush3.xpose.msk.msra.mxu1 %vm397_vm3, %v594_v21  ;;  %1434 = vmatprep.mubr.msk.f32.mxu1 %vm1804_vm0, %v1805_v1 }
 0x4d9   : > { %1437 = vmatprep.subr.mxu1 %v1805_v1 }
 0x4db   : > { %1435 = vmatmul.mubr.msk.f32.vlgmr.msra.gmra.mrb[4].mxu1 %vm397_vm3, %v591_v22 }
 0x4dc   : > { %1439 = vmatprep.mubr.msk.f32.mxu1 %vm1804_vm0, %v1805_v1 }
 0x57c   : > { %v861_v30 = vpop.f32.mrb[2].mxu0 }
 0x57d   : > { %v1446_v31 = vpop.f32.mrb[3].mxu0  ;;  %v865_v32 = vsel %vm397_vm3, %v861_v30, -inf }
 0x57e   : > { %866 = vmax.xlane.f32.xlu1 %v865_v32 }
 0x584   : > { %v1054_v33 = vpop.f32.mrb[4].mxu0 }
 0x585   : > { %v1456_v34 = vpop.f32.mrb[5].mxu0  ;;  %v1058_v35 = vsel %vm397_vm3, %v1054_v33, -inf }
 0x586   : > { %1059 = vmax.xlane.f32.xlu1 %v1058_v35 }
 0x5aa   : > { %v2175_v36 = vpop.f32.mrb[2].mxu1 }
 0x5ab   : > { %v1431_v37 = vpop.f32.mrb[3].mxu1 }
 0x5ae   : > { %v665_v38 = vpop.f32.mrb[4].mxu1 }
 0x5af   : > { %v1436_v39 = vpop.f32.mrb[5].mxu1  ;;  %v669_v40 = vsel %vm397_vm3, %v665_v38, -inf }
 0x5b0   : > { %670 = vmax.xlane.f32.xlu0 %v669_v40 }
 0x5c6   : > { %876 = vrot.lane.b32.xlu0 %v2086_v10, %s1819_s26 }
 0x60b   : > { %v867_v41 = vpop.xlane.xlu1 %866 }
 0x60c   : > { %v868_v42 = vsub.f32 %v861_v30, %v867_v41 }
 0x60e   : > { %v869_v43 = vmul.f32 1.442695, %v868_v42 }
 0x610   : > { %1595 = vpow2.f32 %v869_v43 }
 0x613   : > { %v1060_v44 = vpop.xlane.xlu1 %1059 }
 0x614   : > { %v1061_v45 = vsub.f32 %v1054_v33, %v1060_v44 }
 0x616   : > { %v1062_v46 = vmul.f32 1.442695, %v1061_v45 }
 0x618   : > { %1597 = vpow2.f32 %v1062_v46 }
 0x61a   : > { %v1596_v47 = vpop.eup %1595 }
 0x61b   : > { %v871_v48 = vsel %vm397_vm3, %v1596_v47, 0.0 }
 0x61c   : > { %872 = vadd.xlane.f32.xlu1 %v871_v48 }
 0x622   : > { %v1598_v49 = vpop.eup %1597 }
 0x623   : > { %v1064_v50 = vsel %vm397_vm3, %v1598_v49, 0.0 }
 0x624   : > { %1065 = vadd.xlane.f32.xlu1 %v1064_v50 }
 0x635   : > { %680 = vrot.lane.b32.xlu1 %v2086_v10, %s1821_s13 }
 0x63d   : > { %v671_v51 = vpop.xlane.xlu0 %670 }
 0x63e   : > { %v672_v52 = vsub.f32 %v665_v38, %v671_v51 }
 0x640   : > { %v673_v53 = vmul.f32 1.442695, %v672_v52 }
 0x641   : > { %v877_v63 = vpop.permute.xlu0 %876 }
 0x642   : > { %1599 = vpow2.f32 %v673_v53 }
 0x64c   : > { %v1600_v54 = vpop.eup %1599 }
 0x64d   : > { %v675_v55 = vsel %vm397_vm3, %v1600_v54, 0.0 }
 0x659   : > { %676 = vadd.xlane.f32.xlu1 %v675_v55 }
 0x66a   : > { %1069 = vrot.lane.b32.xlu1 %v2086_v10, %s1815_s12  ;;  %s1382_s12 = sshll.u32 %s1882_s22, 7  ;;  %s1830_s22 = smov [#allocation10]  }
 0x66b   : > { %s2209_s13 = scalar_lea.hbm %s2259_s5, %s1382_s12 }
 0x6a9   : > { %v873_v56 = vpop.xlane.xlu1 %872 }
 0x6b1   : > { %v1066_v57 = vpop.xlane.xlu1 %1065 }
 0x6b5   : > { %v681_v58 = vpop.permute.xlu1 %680 }
 0x6b6   : > { %1438 = vmatpush3.msra.mxu1 %v681_v58 }
 0x6b7   : > { %1447 = vmatprep.subr.mxu1 %v1805_v1 }
 0x6e6   : > { %v677_v59 = vpop.xlane.xlu1 %676 }
 0x6e7   : > { %1601 = vrcp.f32 %v677_v59 }
 0x6e8   : > { %1603 = vrcp.f32 %v873_v56 }
 0x6e9   : > { %1605 = vrcp.f32 %v1066_v57 }
 0x6ea   : > { %v1070_v3 = vpop.permute.xlu1 %1069 }
 0x6f1   : > { %v1602_v60 = vpop.eup %1601 }
 0x6f2   : > { %v679_v61 = vmul.f32 %v1602_v60, %v1600_v54  ;;  %v1604_v62 = vpop.eup %1603 }
 0x6f3   : > { %v875_v10 = vmul.f32 %v1604_v62, %v1596_v47  ;;  %v1606_v2 = vpop.eup %1605 }
 0x6f4   : > { %1440 = vmatmul.mubr.msk.f32.vlgmr.msra.gmra.mrb[6].mxu1 %vm397_vm3, %v679_v61  ;;  %v1068_v4 = vmul.f32 %v1606_v2, %v1598_v49 }
 0x6f5   : > { %1448 = vmatpush3.msra.mxu1 %v877_v63  ;;  %1449 = vmatprep.mubr.msk.f32.mxu1 %vm1804_vm0, %v1805_v1 }
 0x6f6   : > { %1457 = vmatprep.subr.mxu1 %v1805_v1 }
 0x6f8   : > { %1450 = vmatmul.mubr.msk.f32.vlgmr.msra.gmra.mrb[8].mxu1 %vm397_vm3, %v875_v10 }
 0x6f9   : > { %1458 = vmatpush3.msra.mxu1 %v1070_v3  ;;  %1459 = vmatprep.mubr.msk.f32.mxu1 %vm1804_vm0, %v1805_v1 }
 0x6fc   : > { %1460 = vmatmul.mubr.msk.f32.vlgmr.msra.gmra.mrb[10].mxu1 %vm397_vm3, %v1068_v4 }
 0x7c7   : > { %v752_v12 = vpop.f32.mrb[6].mxu1 }
 0x7c8   : > { %1146 = vrot.lane.b32.xlu1 %v752_v12, %s1816_s27  ;;  %v1441_v13 = vpop.f32.mrb[7].mxu1  ;;  %s281_s27 = scalar_lea.vmem [#allocation10], %s1362_s23  ;;  %s1725_s23 = sshll.u32 %s1830_s22, 4  ;;  %s1726_s23 = int_to_ptr.vmem [resolvable:$false] %s1725_s23 }
 0x7c9   : > { %s1254_s24 = sshll.u32 %s281_s27, 4  ;;  %s1727_s7 = scalar_lea.vmem %s1726_s23, 256  ;;  %s2211_s24 = int_to_ptr.vmem [resolvable:$true] %s1254_s24 }
 0x7ca   : > { %s1721_s16 = scalar_lea.vmem %s2211_s24, 128  ;;  %p1728_p12 = scmp.lt.s32.totalorder %s2211_s24, %s1726_s23 }
 0x7cb   : > { %v948_v14 = vpop.f32.mrb[8].mxu1  ;;  %p1722_p10 = scmp.ne.s32.totalorder %s2211_s24, %s1721_s16  ;;  %p1729_p2 = scmp.lt.s32.totalorder %s1727_s7, %s1721_s16 }
 0x7cc   : > { %1150 = vrot.lane.b32.xlu1 %v948_v14, %s1820_s11  ;;  %v1451_v1 = vpop.f32.mrb[9].mxu1 }
 0x7cd   : > { %p1723_p3 = pnand %p1722_p10, %p2006_p5  ;;  %p1730_p1 = por %p1729_p2, %p1728_p12 }
 0x7cf   : > { %v1141_v15 = vpop.f32.mrb[10].mxu1  ;;  %p1724_p7 = pneg %p1723_p3 }
 0x7d0   : > { %1154 = vrot.lane.b32.xlu0 %v1141_v15, %s1822_s15  ;;  %v1461_v16 = vpop.f32.mrb[11].mxu1  ;;  %s1241_s15 = scalar_lea.sflag [#allocation4], %s2051_s6 }
 0x7d1   : > { %p1731_p4 = pnand %p1730_p1, %p1724_p7 }
 0x83a   : > { %v1147_v17 = vpop.permute.xlu1 %1146 }
 0x83b   : > { %v1157_v18 = vsel %vm397_vm3, %v2175_v36, %v1147_v17 }
 0x83e   : > { %v1151_v0 = vpop.permute.xlu1 %1150 }
 0x83f   : > { %v1159_v19 = vsel %vm1158_vm4, %v1157_v18, %v1151_v0 }
 0x842   : > { %v1155_v20 = vpop.permute.xlu0 %1154 }
 0x843   : > { %v1161_v21 = vsel %vm1160_vm5, %v1159_v19, %v1155_v20 }
 0x844   : > { %1471 = vmatmul.mubr.msk.f32.vlgmr.msra.gmra.mrb[6].mxu0 %vm287_vm1, %v1161_v21 }
 0x917   : > { %v1235_v22 = vpop.f32.mrb[6].mxu0 }
 0x918   : > { %1239 = vst.msk [vmem:[%s281_s27] sm:$0xff] %vm287_vm1, %v1235_v22  ;;  %v1472_v23 = vpop.f32.mrb[7].mxu0 }
 0x919   : > { %1734 = shalt.err (!%p1731_p4)
}
 0x91a   : > { %s1735_s6 = scalar_lea.hbm %s2209_s13, 128  ;;  %s1739_s9 = scalar_lea.hbm %s2259_s5, 256 }
 0x91b   : > { %p1736_p0 = scmp.ne.s32.totalorder %s2209_s13, %s1735_s6  ;;  %p1740_p8 = scmp.lt.u32.totalorder %s2209_s13, %s2259_s5 }
 0x91c   : > { %p1741_p13 = scmp.lt.u32.totalorder %s1739_s9, %s1735_s6  ;;  %p1743_p10 = scmp.lt.u32.totalorder %s1735_s6, %s2209_s13 }
 0x91d   : > { %p1737_p9 = pnand %p1736_p0, %p2006_p5 }
 0x91e   : > { %p1742_p6 = por %p1741_p13, %p1740_p8 }
 0x91f   : > { %p1738_p11 = pneg %p1737_p9 }
 0x920   : > { %p1744_p3 = por %p1743_p10, %p1742_p6 }
 0x922   : > { %p1745_p7 = pnand %p1744_p3, %p1738_p11 }
 0x924   : > { %1748 = shalt.err (!%p1745_p7)
}
 0x925   : > { %1499 = dma.vmem_to_hbm [thread:$0]  (%p2006_p5), %s2211_s24, 128, %s2209_s13, %s1241_s15  }
 0x926 PF: > { %s1266_s12 = sand.u32 1, %s1783_s18   ;;  %p2277_p12 = scmp.ne.s32.totalorder %s2264_s25, 0 }
 0x927   : > { %p2278_p2 = scmp.ge.s32.totalorder %s1795_s21, 2  ;;  %s1267_s27 = scalar_lea.sflag [#allocation4], %s1266_s12 }
 0x929   : > { %p1516_p1 = pnand %p2278_p2, %p2277_p12 }
 0x92b   : > { %1778 = dma.done.wait (!%p1516_p1), %s1267_s27, 128  }
 0x92c   : > { %1780 = vsyncadd (!%p1516_p1), %s1267_s27, 4294967168  ;;  %p20_p4 = scmp.ge.s32.totalorder %s1992_s14, 4   ;;  %s2279_s18 = smov %s1787_s19 }
 0x92d   : > { %s2280_s19 = smov %s1791_s20  ;;  %s2281_s20 = smov %s2002_s28 }
 0x92e   : > { %s2282_s21 = smov %s1992_s14  ;;  %22 = sbr.rel (!%p20_p4) target bundleno = 7 (0x7), region = 97 }
 0x935   :  { %1272 = vsyncpa [#allocation3], 1 }
 0x936   :  { %1274 = vsyncpa [#allocation3 + $0x1], 1 }
 0x937   :  { %1275 = vsyncpa [#allocation6], 1 }
 0x938   :  { %1276 = vsyncpa [#allocation9], 1 }
 0x939   :  { %1277 = vsyncpa [#allocation4], 1 }
 0x93a   :  { %1279 = vsyncpa [#allocation4 + $0x1], 1 }

</bundles_post_ra>
